<compile_context>
chip_gen: v7x
topology: tpu7x:2x2x1
jax: 0.10.0
libtpu: 0.0.40
codegen_flags: <defaults>
</compile_context>

<pallas_src>
import functools

import jax
import jax.numpy as jnp
from jax.experimental import pallas as pl
from jax.experimental.pallas import tpu as pltpu

GAMMA = 2.0
ALPHA = 0.3

_TARGET_F32_TILE_BYTES = 4 * 1024 * 1024   # target f32 working set per logits tile
_VMEM_LIMIT_CAP = 48 * 1024 * 1024         # stays under v7x's 64 MiB/TC physical VMEM
_VMEM_LIMIT_FLOOR = 16 * 1024 * 1024


def _round_up(x, m):
    return ((x + m - 1) // m) * m


def _focal_loss_kernel(logits_ref, tgt_ref, out_ref, *, n_valid, gamma, alpha, fuse):
    """One grid step: masked partial (unnormalized) focal-loss sum for a row tile."""
    i = pl.program_id(0)
    tile_n = logits_ref.shape[0]

    logits = logits_ref[...].astype(jnp.float32)   # (TILE_N, C), f32 math
    tgt = tgt_ref[...]                             # (TILE_N, 1) int32

    # Numerically-stable per-row softmax pieces.
    row_max = jnp.max(logits, axis=-1, keepdims=True)                  # (TILE_N, 1)
    shifted = logits - row_max                                         # <= 0
    exp_shifted = jnp.exp(shifted)
    sum_exp = jnp.sum(exp_shifted, axis=-1, keepdims=True)             # >= 1

    # Gather the target-class column with a lane-iota mask (no gather op on TPU).
    # NOTE: out-of-range targets silently select 0 instead of erroring like PyTorch.
    col_idx = jax.lax.broadcasted_iota(jnp.int32, logits.shape, 1)
    tgt_mask = col_idx == tgt
    tgt_shifted = jnp.sum(jnp.where(tgt_mask, shifted, 0.0),
                          axis=-1, keepdims=True)                      # logit[t] - max

    ce = jnp.log(sum_exp) - tgt_shifted                                # = lse - logit[t]
    # pt = exp(-ce), reusing exp(shifted)[target] and sum_exp (no second exp per row).
    pt = jnp.sum(jnp.where(tgt_mask, exp_shifted, 0.0),
                 axis=-1, keepdims=True) / sum_exp
    one_minus_pt = jnp.maximum(1.0 - pt, 0.0)
    if gamma == 2.0:
        w = one_minus_pt * one_minus_pt          # static gamma=2 -> plain multiply
    else:
        w = jnp.power(one_minus_pt, jnp.float32(gamma))
    focal = alpha * w * ce                                             # (TILE_N, 1)

    # Mask padded rows of the last (partial) tile; wrapper divides by true N.
    row_idx = i * tile_n + jax.lax.broadcasted_iota(jnp.int32, focal.shape, 0)
    focal = jnp.where(row_idx < n_valid, focal, 0.0)
    tile_sum = jnp.sum(focal)

    if fuse:
        # Accumulator output (same block every step; grid axis is "arbitrary").
        @pl.when(i == 0)
        def _init():
            out_ref[...] = jnp.zeros_like(out_ref)
        out_ref[...] = out_ref[...] + tile_sum
    else:
        # Per-tile partial, written as a lane-dense (8,128) block (unmasked store).
        out_ref[...] = jnp.full(out_ref.shape, tile_sum, dtype=out_ref.dtype)


def _multi_tensorcore_default():
    """True on chips where a 'parallel' batch axis shards across >1 TensorCore."""
    try:
        kind = jax.devices()[0].device_kind.lower()
    except Exception:
        return False
    return any(tok in kind for tok in ("v4", "v5p", "7"))


def _choose_tile_n(n, c, *, want_multi_tile):
    """Pick TILE_N by bytes: ~4 MiB of f32 working set per tile, multiple of 8.
    If one tile would cover the whole batch, use exactly N (a full-array block is
    always layout-legal).  On multi-TensorCore chips cap the tile so num_tiles>=2."""
    n_padded = _round_up(n, 8)
    rows = max(8, (_TARGET_F32_TILE_BYTES // max(1, 4 * c)) // 8 * 8)
    tile = min(rows, n_padded)
    if want_multi_tile and n_padded >= 16:
        tile = min(tile, _round_up(pl.cdiv(n_padded, 2), 8))
    if tile >= n_padded:
        tile = n
    return max(1, tile)


def _vmem_limit_bytes(tile_n, c, in_itemsize):
    """Budget: 2x double-buffered inputs + ~5x full-tile f32 intermediates + slack."""
    in_bytes = tile_n * c * in_itemsize + tile_n * 4
    f32_tile = tile_n * c * 4
    need = 2 * in_bytes + 5 * f32_tile + (1 << 20)
    return int(min(max(need, _VMEM_LIMIT_FLOOR), _VMEM_LIMIT_CAP))


def focal_loss(logits, targets, *, gamma=GAMMA, alpha=ALPHA,
               tile_n=None, multi_core=None):
    """logits: (N, C) float32/bfloat16, targets: (N,) int -> scalar float32."""
    n, c = logits.shape
    tgt2d = targets.astype(jnp.int32).reshape(n, 1)

    if multi_core is None:
        multi_core = _multi_tensorcore_default()
    if tile_n is None:
        tile_n = _choose_tile_n(n, c, want_multi_tile=multi_core)
    num_tiles = pl.cdiv(n, tile_n)
    fuse = (not multi_core) or num_tiles == 1

    kernel = functools.partial(_focal_loss_kernel, n_valid=n,
                               gamma=gamma, alpha=alpha, fuse=fuse)
    cost = pl.CostEstimate(
        flops=int(8 * n * c),
        transcendentals=int(n * c + 2 * n),
        bytes_accessed=int(n * c * logits.dtype.itemsize + n * 4 + 4),
    )
    in_specs = [
        pl.BlockSpec((tile_n, c), lambda i: (i, 0)),
        pl.BlockSpec((tile_n, 1), lambda i: (i, 0)),
    ]
    vmem = _vmem_limit_bytes(tile_n, c, logits.dtype.itemsize)

    if fuse:
        # Single-TensorCore path: fuse the reduction into the kernel.
        out = pl.pallas_call(
            kernel,
            out_shape=jax.ShapeDtypeStruct((1, 1), jnp.float32),
            grid=(num_tiles,),
            in_specs=in_specs,
            out_specs=pl.BlockSpec((1, 1), lambda i: (0, 0)),
            compiler_params=pltpu.CompilerParams(
                dimension_semantics=("arbitrary",), vmem_limit_bytes=vmem),
            cost_estimate=cost,
        )(logits, tgt2d)
        total = out[0, 0]
    else:
        # Multi-TensorCore path: independent per-tile partials, "parallel" axis.
        out = pl.pallas_call(
            kernel,
            out_shape=jax.ShapeDtypeStruct((8, 128 * num_tiles), jnp.float32),
            grid=(num_tiles,),
            in_specs=in_specs,
            out_specs=pl.BlockSpec((8, 128), lambda i: (0, i)),
            compiler_params=pltpu.CompilerParams(
                dimension_semantics=("parallel",), vmem_limit_bytes=vmem),
            cost_estimate=cost,
        )(logits, tgt2d)
        total = jnp.sum(out[0, ::128])

    return total / jnp.float32(n)


def focal_loss_ref(logits, targets, gamma=GAMMA, alpha=ALPHA):
    """Plain-JAX reference of the PyTorch forward, for sanity checking."""
    logits = logits.astype(jnp.float32)
    lse = jax.nn.logsumexp(logits, axis=-1)
    tgt_logit = jnp.take_along_axis(logits, targets[:, None], axis=-1)[:, 0]
    ce = lse - tgt_logit
    pt = jnp.exp(-ce)
    return jnp.mean(alpha * (1.0 - pt) ** gamma * ce)


if __name__ == "__main__":
    key = jax.random.PRNGKey(0)
    k1, k2, k3, k4, k5, k6 = jax.random.split(key, 6)

    # Case 1: f32 logits, forced small tile -> multi-step grid with a ragged
    # last tile (exercises row-validity masking and the accumulation path).
    N1, C1 = 40, 32
    logits1 = jax.random.normal(k1, (N1, C1), dtype=jnp.float32)
    targets1 = jax.random.randint(k2, (N1,), 0, C1, dtype=jnp.int32)
    loss1 = focal_loss(logits1, targets1, tile_n=16)
    jax.block_until_ready(loss1)
    ref1 = focal_loss_ref(logits1, targets1)
    assert jnp.allclose(loss1, ref1, rtol=1e-5, atol=1e-6), (loss1, ref1)

    # Case 2: bf16 logits (half the HBM traffic), automatic byte-sized tile.
    N2, C2 = 64, 32
    logits2 = jax.random.normal(k3, (N2, C2), dtype=jnp.float32).astype(jnp.bfloat16)
    targets2 = jax.random.randint(k4, (N2,), 0, C2, dtype=jnp.int32)
    loss2 = focal_loss(logits2, targets2)
    jax.block_until_ready(loss2)
    ref2 = focal_loss_ref(logits2, targets2)   # reference upcasts the same bf16 values
    assert jnp.allclose(loss2, ref2, rtol=1e-5, atol=1e-6), (loss2, ref2)

    # Case 3: N not a multiple of 8, auto tile -> single full-array block.
    N3, C3 = 50, 48
    logits3 = jax.random.normal(k5, (N3, C3), dtype=jnp.float32)
    targets3 = jax.random.randint(k6, (N3,), 0, C3, dtype=jnp.int32)
    loss3 = focal_loss(logits3, targets3)
    jax.block_until_ready(loss3)
    ref3 = focal_loss_ref(logits3, targets3)
    assert jnp.allclose(loss3, ref3, rtol=1e-5, atol=1e-6), (loss3, ref3)

    # Case 4: explicitly exercise the multi-TensorCore partial-sums path
    # (parallel grid axis + lane-dense partial blocks), regardless of chip.
    loss4 = focal_loss(logits1, targets1, tile_n=16, multi_core=True)
    jax.block_until_ready(loss4)
    assert jnp.allclose(loss4, ref1, rtol=1e-5, atol=1e-6), (loss4, ref1)

    print("KERNEL_OK")
</pallas_src>

<mosaic_0001>
module attributes {stable_mosaic.version = 11 : i64} {
  func.func @_focal_loss_kernel(%arg0: i32, %arg1: memref<16x32xf32, #tpu.memory_space<vmem>>, %arg2: memref<16x1xi32, #tpu.memory_space<vmem>>, %arg3: memref<1x1xf32, #tpu.memory_space<vmem>>) attributes {dimension_semantics = [#tpu.dimension_semantics<arbitrary>], iteration_bounds = array<i64: 3>, scalar_prefetch = 0 : i64, scratch_operands = 0 : i64, tpu.core_type = #tpu.core_type<tc>, window_params = [{transform_indices = @transform_0, window_bounds = array<i64: 16, 32>}, {transform_indices = @transform_1, window_bounds = array<i64: 16, 1>}, {pipeline_mode = #tpu.pipeline_mode<synchronous>, transform_indices = @transform_2, window_bounds = array<i64: 1, 1>}]} {
    %c0 = arith.constant 0 : index
    %c0_0 = arith.constant 0 : index
    %0 = vector.load %arg1[%c0, %c0_0] : memref<16x32xf32, #tpu.memory_space<vmem>>, vector<16x32xf32>
    %c0_1 = arith.constant 0 : index
    %c0_2 = arith.constant 0 : index
    %1 = vector.load %arg2[%c0_1, %c0_2] : memref<16x1xi32, #tpu.memory_space<vmem>>, vector<16x1xi32>
    %cst = arith.constant dense<0xFF800000> : vector<16xf32>
    %2 = vector.multi_reduction <maximumf>, %0, %cst [1] : vector<16x32xf32> to vector<16xf32>
    %3 = vector.shape_cast %2 : vector<16xf32> to vector<16x1xf32>
    %4 = vector.broadcast %3 : vector<16x1xf32> to vector<16x32xf32>
    %5 = arith.subf %0, %4 : vector<16x32xf32>
    %6 = math.exp %5 : vector<16x32xf32>
    %cst_3 = arith.constant dense<0.000000e+00> : vector<16xf32>
    %7 = vector.multi_reduction <add>, %6, %cst_3 [1] : vector<16x32xf32> to vector<16xf32>
    %8 = vector.shape_cast %7 : vector<16xf32> to vector<16x1xf32>
    %9 = tpu.iota {dimensions = array<i32: 1>} : vector<16x32xi32>
    %10 = vector.broadcast %1 : vector<16x1xi32> to vector<16x32xi32>
    %11 = arith.cmpi eq, %9, %10 : vector<16x32xi32>
    %cst_4 = arith.constant 0.000000e+00 : f32
    %12 = vector.broadcast %cst_4 : f32 to vector<16x32xf32>
    %13 = arith.select %11, %5, %12 : vector<16x32xi1>, vector<16x32xf32>
    %cst_5 = arith.constant dense<0.000000e+00> : vector<16xf32>
    %14 = vector.multi_reduction <add>, %13, %cst_5 [1] : vector<16x32xf32> to vector<16xf32>
    %15 = vector.shape_cast %14 : vector<16xf32> to vector<16x1xf32>
    %16 = math.log %8 : vector<16x1xf32>
    %17 = arith.subf %16, %15 : vector<16x1xf32>
    %cst_6 = arith.constant 0.000000e+00 : f32
    %18 = vector.broadcast %cst_6 : f32 to vector<16x32xf32>
    %19 = arith.select %11, %6, %18 : vector<16x32xi1>, vector<16x32xf32>
    %cst_7 = arith.constant dense<0.000000e+00> : vector<16xf32>
    %20 = vector.multi_reduction <add>, %19, %cst_7 [1] : vector<16x32xf32> to vector<16xf32>
    %21 = vector.shape_cast %20 : vector<16xf32> to vector<16x1xf32>
    %22 = arith.divf %21, %8 : vector<16x1xf32>
    %cst_8 = arith.constant 1.000000e+00 : f32
    %23 = vector.broadcast %cst_8 : f32 to vector<16x1xf32>
    %24 = arith.subf %23, %22 : vector<16x1xf32>
    %cst_9 = arith.constant 0.000000e+00 : f32
    %25 = vector.broadcast %cst_9 : f32 to vector<16x1xf32>
    %26 = arith.maximumf %24, %25 : vector<16x1xf32>
    %27 = arith.mulf %26, %26 : vector<16x1xf32>
    %cst_10 = arith.constant 3.000000e-01 : f32
    %28 = vector.broadcast %cst_10 : f32 to vector<16x1xf32>
    %29 = arith.mulf %28, %27 : vector<16x1xf32>
    %30 = arith.mulf %29, %17 : vector<16x1xf32>
    %c16_i32 = arith.constant 16 : i32
    %31 = arith.muli %arg0, %c16_i32 : i32
    %32 = tpu.iota {dimensions = array<i32: 0>} : vector<16x1xi32>
    %33 = vector.broadcast %31 : i32 to vector<16x1xi32>
    %34 = arith.addi %33, %32 : vector<16x1xi32>
    %c40_i32 = arith.constant 40 : i32
    %35 = vector.broadcast %c40_i32 : i32 to vector<16x1xi32>
    %36 = arith.cmpi slt, %34, %35 : vector<16x1xi32>
    %cst_11 = arith.constant 0.000000e+00 : f32
    %37 = vector.broadcast %cst_11 : f32 to vector<16x1xf32>
    %38 = arith.select %36, %30, %37 : vector<16x1xi1>, vector<16x1xf32>
    %39 = vector.shape_cast %38 : vector<16x1xf32> to vector<1x16x1xf32>
    %cst_12 = arith.constant dense<0.000000e+00> : vector<1xf32>
    %40 = vector.multi_reduction <add>, %39, %cst_12 [1, 2] : vector<1x16x1xf32> to vector<1xf32>
    %41 = vector.shape_cast %40 : vector<1xf32> to vector<1x1x1xf32>
    %42 = vector.extract %41[0, 0, 0] : f32 from vector<1x1x1xf32>
    %c0_i32 = arith.constant 0 : i32
    %43 = arith.cmpi eq, %arg0, %c0_i32 : i32
    %44 = arith.extui %43 : i1 to i32
    %c0_i32_13 = arith.constant 0 : i32
    %45 = arith.cmpi ne, %44, %c0_i32_13 : i32
    scf.if %45 {
      %cst_18 = arith.constant 0.000000e+00 : f32
      %50 = vector.broadcast %cst_18 : f32 to vector<1x1xf32>
      %c0_19 = arith.constant 0 : index
      %c0_20 = arith.constant 0 : index
      %51 = vector.load %arg3[%c0_19, %c0_20] : memref<1x1xf32, #tpu.memory_space<vmem>>, vector<1x1xf32>
      tpu.vector_store %arg3[%c0_19, %c0_20], %50 {strides = array<i32>} : memref<1x1xf32, #tpu.memory_space<vmem>>, vector<1x1xf32>,
    } else {
    }
    %c0_14 = arith.constant 0 : index
    %c0_15 = arith.constant 0 : index
    %46 = vector.load %arg3[%c0_14, %c0_15] : memref<1x1xf32, #tpu.memory_space<vmem>>, vector<1x1xf32>
    %47 = vector.broadcast %42 : f32 to vector<1x1xf32>
    %48 = arith.addf %46, %47 : vector<1x1xf32>
    %c0_16 = arith.constant 0 : index
    %c0_17 = arith.constant 0 : index
    %49 = vector.load %arg3[%c0_16, %c0_17] : memref<1x1xf32, #tpu.memory_space<vmem>>, vector<1x1xf32>
    tpu.vector_store %arg3[%c0_16, %c0_17], %48 {strides = array<i32>} : memref<1x1xf32, #tpu.memory_space<vmem>>, vector<1x1xf32>,
    return
  }
  func.func @transform_0(%arg0: i32) -> (i32, i32) {
    %c0_i32 = arith.constant 0 : i32
    %c0_i32_0 = arith.constant 0 : i32
    return %arg0, %c0_i32 : i32, i32
  }
  func.func @transform_1(%arg0: i32) -> (i32, i32) {
    %c0_i32 = arith.constant 0 : i32
    %c0_i32_0 = arith.constant 0 : i32
    return %arg0, %c0_i32 : i32, i32
  }
  func.func @transform_2(%arg0: i32) -> (i32, i32) {
    %c0_i32 = arith.constant 0 : i32
    %c0_i32_0 = arith.constant 0 : i32
    %c0_i32_1 = arith.constant 0 : i32
    return %c0_i32, %c0_i32_0 : i32, i32
  }
}

</mosaic_0001>

<bundles_post_ra>
// kernel: tpu_custom_call.1
= control target key start
LH: loop header
LB: loop body
LE: loop exit
PB: predicated region body
PF: predicated region fallthrough
CT: control target
= control target key end

     0   :  { %7 = vsyncpa [#allocation3], 0  ;;  %s459_s9 = smov 0   ;;  %s512_s0 = inlined_call_operand.vmem [shape: f32[40,32], index: 0, kind: input, shape index: {}]   ;;  %s513_s1 = inlined_call_operand.vmem [shape: s32[40,1], index: 1, kind: input, shape index: {}]   ;;  %s514_s2 = inlined_call_operand.hbm [shape: f32[1,1], index: 2, kind: output, shape index: {}]  }
   0x1 LB: > { %s465_s10 = sadd.s32 4294967295, %s439_s9   ;;  %p359_p0 = scmp.ge.s32.totalorder %s439_s9, 1  ;;  %s439_s9 = sphi %s459_s9, %s13_s9  }
   0x2   : > { %p136_p1 = scmp.lt.s32.totalorder %s439_s9, 4 }
   0x4   : > { %p137_p2 = pnand %p359_p0, %p136_p1 }
   0x5   : > { %s360_s11 = sshll.u32 (!%p137_p2), %s465_s10, 1  ;;  %v441_v0 = vmov (!%p137_p2), 0   ;;  %vm198_vm0 = vcmask (!%p137_p2), 261120   ;;  %v217_v13 = vlaneseq (!%p137_p2)  ;;  %s364_s19 = sshll.u32 (!%p137_p2), %s465_s10, 4  ;;  %vm274_vm5 = vcmask (!%p137_p2), 7168  }
   0x6   : > { %140 = sbr.rel (%p137_p2) target bundleno = 578 (0x242), region = 28  ;;  %p171_p3 = scmp.lt.s32.totalorder (!%p137_p2), %s360_s11, 4  ;;  %389 = vset.pattern.permute.xlu1 (!%p137_p2), %v441_v0  ;;  %390 = vset.pattern.permute.xlu0 (!%p137_p2), %v441_v0  ;;  %v267_v43 = vstv (!%p137_p2), %s364_s19 }
   0x7   : > { %v218_v15 = vand.u32 (!%p137_p2), 127, %v217_v13  ;;  %v265_v38 = vshrl.u32 (!%p137_p2), %v217_v13, 7  ;;  %p365_p4 = scmp.ne.s32.totalorder (!%p137_p2), %s465_s10, 0 }
   0x9   : > { %v266_v45 = vadd.s32 (!%p137_p2), 8, %v265_v38  ;;  %v268_v48 = vadd.s32 (!%p137_p2), %v267_v43, %v265_v38 }
   0xb   : > { %v269_v54 = vadd.s32 (!%p137_p2), %v267_v43, %v266_v45  ;;  %vm270_vm3 = vcmp.lt.s32.totalorder (!%p137_p2), %v268_v48, 40 }
   0xd   : > { %s516_s11 = smov (!%p171_p3, %s360_s11), 4  ;;  %vm271_vm4 = vcmp.lt.s32.totalorder %v269_v54, 40  ;;  %vm291_vm6 = vcmask (!%p365_p4), 0  }
   0xe   : > { %s361_s12 = sshll.u32 %s516_s11, 3 }
   0xf   : > { %s174_s15 = scalar_lea.vmem %s512_s0, %s361_s12  ;;  %s188_s18 = scalar_lea.vmem %s513_s1, %s361_s12 }
  0x10   : > { %v194_v1 = vld [vmem:[%s174_s15] sm:$0xff]  ;;  %v195_v2 = vld [vmem:[%s174_s15 + $0x8] sm:$0xff] }
  0x11   : > { %v196_v3 = vld [vmem:[%s188_s18] sm:$0xff]  ;;  %v199_v4 = vsel %vm198_vm0, %v194_v1, -inf  ;;  %v197_v5 = vld [vmem:[%s188_s18 + $0x8] sm:$0xff]  ;;  %v202_v6 = vsel %vm198_vm0, %v195_v2, -inf }
  0x12   : > { %220 = vperm.xlu1 %389, %v196_v3   ;;  %200 = vmax.xlane.f32.xlu0 %v199_v4 }
  0x16   : > { %223 = vperm.xlu1 %389, %v197_v5   ;;  %203 = vmax.xlane.f32.xlu0 %v202_v6 }
  0x91   : > { %v221_v14 = vpop.permute.xlu1 %220 }
  0x92   : > { %vm225_vm1 = vcmp.eq.s32.totalorder %v218_v15, %v221_v14 }
  0x95   : > { %v224_v18 = vpop.permute.xlu1 %223 }
  0x96   : > { %vm226_vm2 = vcmp.eq.s32.totalorder %v218_v15, %v224_v18 }
  0x9f   : > { %v201_v7 = vpop.xlane.xlu0 %200 }
  0xa0   : > { %v205_v8 = vsub.f32 %v194_v1, %v201_v7 }
  0xa2   : > { %v207_v9 = vmul.f32 1.442695, %v205_v8  ;;  %v227_v25 = vsel %vm225_vm1, %v205_v8, 0.0  ;;  %v442_v8 = vmov (!%p365_p4), 0.0  }
  0xa3   : > { %v204_v10 = vpop.xlane.xlu0 %203  ;;  %v229_v26 = vsel %vm198_vm0, %v227_v25, 0.0  ;;  %292 = vst.msk [vmem:[#allocation2] sm:$0x1] (!%p365_p4), %vm291_vm6, %v442_v8 }
  0xa4   : > { %391 = vpow2.f32 %v207_v9  ;;  %v206_v11 = vsub.f32 %v195_v2, %v204_v10 }
  0xa6   : > { %v209_v12 = vmul.f32 1.442695, %v206_v11  ;;  %v228_v27 = vsel %vm226_vm2, %v206_v11, 0.0 }
  0xa7   : > { %v232_v28 = vsel %vm198_vm0, %v228_v27, 0.0 }
  0xa8   : > { %393 = vpow2.f32 %v209_v12 }
  0xae   : > { %v392_v16 = vpop.eup %391 }
  0xaf   : > { %v211_v17 = vsel %vm198_vm0, %v392_v16, 0.0  ;;  %v241_v19 = vsel %vm225_vm1, %v392_v16, 0.0 }
  0xb0   : > { %212 = vadd.xlane.f32.xlu0 %v211_v17  ;;  %v243_v21 = vsel %vm198_vm0, %v241_v19, 0.0 }
  0xb2   : > { %v394_v20 = vpop.eup %393 }
  0xb3   : > { %v214_v22 = vsel %vm198_vm0, %v394_v20, 0.0  ;;  %v242_v23 = vsel %vm226_vm2, %v394_v20, 0.0 }
  0xb4   : > { %244 = vadd.xlane.f32.xlu0 %v243_v21  ;;  %215 = vadd.xlane.f32.xlu1 %v214_v22  ;;  %v246_v24 = vsel %vm198_vm0, %v242_v23, 0.0 }
  0xb8   : > { %247 = vadd.xlane.f32.xlu0 %v246_v24 }
  0xbc   : > { %230 = vadd.xlane.f32.xlu0 %v229_v26 }
  0xc0   : > { %233 = vadd.xlane.f32.xlu0 %v232_v28 }
 0x13d   : > { %v213_v29 = vpop.xlane.xlu0 %212 }
 0x13e   : > { %395 = vrcp.f32 %v213_v29 }
 0x13f   : > { %397 = vlog2.f32 %v213_v29 }
 0x141   : > { %v216_v30 = vpop.xlane.xlu1 %215  ;;  %v245_v31 = vpop.xlane.xlu0 %244 }
 0x142   : > { %399 = vrcp.f32 %v216_v30 }
 0x143   : > { %401 = vlog2.f32 %v216_v30 }
 0x145   : > { %v248_v32 = vpop.xlane.xlu0 %247 }
 0x148   : > { %v396_v33 = vpop.eup %395 }
 0x149   : > { %v250_v34 = vmul.f32 %v396_v33, %v245_v31  ;;  %v398_v35 = vpop.eup %397  ;;  %v231_v39 = vpop.xlane.xlu0 %230 }
 0x14a   : > { %v236_v42 = vmul.f32 0.6931472, %v398_v35 }
 0x14b   : > { %v253_v36 = vsub.f32 1.0, %v250_v34 }
 0x14c   : > { %v400_v37 = vpop.eup %399  ;;  %v239_v51 = vsub.f32 %v236_v42, %v231_v39 }
 0x14d   : > { %v255_v40 = vmax.f32 %v253_v36, 0.0  ;;  %v252_v41 = vmul.f32 %v400_v37, %v248_v32  ;;  %v402_v44 = vpop.eup %401  ;;  %v234_v53 = vpop.xlane.xlu0 %233 }
 0x14e   : > { %v238_v52 = vmul.f32 0.6931472, %v402_v44 }
 0x14f   : > { %v257_v46 = vmul.f32 %v255_v40, %v255_v40  ;;  %v254_v47 = vsub.f32 1.0, %v252_v41 }
 0x150   : > { %v240_v58 = vsub.f32 %v238_v52, %v234_v53 }
 0x151   : > { %v259_v49 = vmul.f32 0.3, %v257_v46  ;;  %v256_v50 = vmax.f32 %v254_v47, 0.0 }
 0x153   : > { %v258_v55 = vmul.f32 %v256_v50, %v256_v50  ;;  %v261_v56 = vmul.f32 %v259_v49, %v239_v51 }
 0x155   : > { %v260_v57 = vmul.f32 0.3, %v258_v55  ;;  %v272_v60 = vsel %vm270_vm3, %v261_v56, 0.0 }
 0x156   : > { %v275_v62 = vsel %vm274_vm5, %v272_v60, 0.0 }
 0x157   : > { %v262_v59 = vmul.f32 %v260_v57, %v240_v58 }
 0x159   : > { %v273_v61 = vsel %vm271_vm4, %v262_v59, 0.0 }
 0x15a   : > { %v276_v63 = vsel %vm274_vm5, %v273_v61, 0.0 }
 0x15b   : > { %v277_v0 = vadd.f32 %v276_v63, %v275_v62 }
 0x15d   : > { %278 = vadd.xlane.f32.xlu0 %v277_v0 }
 0x1ea   : > { %v279_v1 = vpop.xlane.xlu0 %278 }
 0x1eb   : > { %v280_v2 = vrot.slane %v279_v1, 4 }
 0x1ed   : > { %v281_v3 = vadd.f32 %v280_v2, %v279_v1 }
 0x1ef   : > { %v282_v4 = vrot.slane %v281_v3, 2 }
 0x1f1   : > { %v283_v5 = vadd.f32 %v282_v4, %v281_v3 }
 0x1f3   : > { %v284_v6 = vrot.slane %v283_v5, 1 }
 0x1f5   : > { %v285_v7 = vadd.f32 %v284_v6, %v283_v5 }
 0x1f7   : > { %370 = vpush %v285_v7 }
 0x222   : > { %290 = sbr.rel (%p365_p4) target bundleno = 553 (0x229), region = 32 }
 0x228   : > { %s371_s20 = spop %370 }
 0x229 PF: > { %v293_v9 = vld [vmem:[#allocation2] sm:$0x1]  ;;  %v294_v10 = vstv %s371_s20  ;;  %vm296_vm7 = vcmask 0   ;;  %p376_p5 = scmp.eq.s32.totalorder %s465_s10, 2  ;;  %s443_s21 = smov [#allocation2]  }
 0x22a   : > { %v295_v11 = vadd.f32 %v294_v10, %v293_v9  ;;  %s305_s22 = sshll.u32 %s443_s21, 4  ;;  %s306_s22 = int_to_ptr.vmem [resolvable:$true] %s305_s22 }
 0x22b   : > { %s403_s23 = scalar_lea.vmem %s306_s22, 16  ;;  %s409_s24 = scalar_lea.vmem %s306_s22, 32 }
 0x22c   : > { %297 = vst.msk [vmem:[#allocation2] sm:$0x1] %vm296_vm7, %v295_v11  ;;  %p404_p6 = scmp.ne.s32.totalorder %s306_s22, %s403_s23  ;;  %p410_p9 = scmp.lt.s32.totalorder %s306_s22, %s306_s22 }
 0x22d   : > { %p411_p10 = scmp.lt.s32.totalorder %s409_s24, %s403_s23 }
 0x22e   : > { %p405_p7 = pnand %p404_p6, %p376_p5 }
 0x22f   : > { %p412_p11 = por %p411_p10, %p410_p9 }
 0x230   : > { %p406_p8 = pneg %p405_p7 }
 0x232   : > { %p413_p12 = pnand %p412_p11, %p406_p8 }
 0x234   : > { %416 = shalt.err (!%p413_p12)
}
 0x235   : > { %s417_s27 = scalar_lea.hbm %s514_s2, 16 }
 0x236   : > { %p418_p13 = scmp.ne.s32.totalorder %s514_s2, %s417_s27  ;;  %p423_p2 = scmp.lt.u32.totalorder %s417_s27, %s514_s2 }
 0x238   : > { %p419_p0 = pnand %p418_p13, %p376_p5 }
 0x23a   : > { %p420_p1 = pneg %p419_p0 }
 0x23c   : > { %p425_p3 = pnand %p423_p2, %p420_p1 }
 0x23e   : > { %428 = shalt.err (!%p425_p3)
}
 0x23f   : > { %373 = dma.vmem_to_hbm [thread:$0]  (%p376_p5), %s306_s22, 16, %s514_s2, [#allocation3]  }
 0x240   : > { %434 = dma.done.wait (%p376_p5), [#allocation3], 16  }
 0x241   : > { %436 = vsyncadd (%p376_p5), [#allocation3], 4294967280 }
 0x242 PF: > { %s13_s9 = sadd.s32 1, %s439_s9  }
 0x243   : > { %p10_p4 = scmp.ge.s32.totalorder %s13_s9, 5  }
 0x245   :  { %12 = sbr.rel (!%p10_p4) target bundleno = 1 (0x1), region = 62 }
 0x24c   :  { %318 = vsyncpa [#allocation3], 1 }
 0x24d   :  { %320 = vsyncpa [#allocation3 + $0x1], 1 }

</bundles_post_ra>
